<compile_context>
chip_gen: v7x
topology: tpu7x:2x2x1
jax: 0.10.0
libtpu: 0.0.40
codegen_flags: <defaults>
</compile_context>

<pallas_src>
import functools

import jax
import jax.numpy as jnp
from jax.experimental import pallas as pl
from jax.experimental.pallas import tpu as pltpu

_EPS = 1e-6            # F.pairwise_distance default eps
_LANE = 128
_MAX_SINGLE_D = 8192   # largest feature dim handled in a single feature tile


def _vmem_capacity_bytes():
    """Physical per-core VMEM; conservative 64 MiB (v7x) if the query fails."""
    try:
        cap = int(pltpu.get_tpu_info().vmem_capacity_bytes)
        if cap > 0:
            return cap
    except Exception:
        pass
    return 64 << 20


def _round_down(x, m):
    return max(m, (x // m) * m)


def _choose_tiles(B, D, itemsize, total_budget, block_b=None, block_d=None):
    """Pick (TB, TD) so 3 inputs x 2 pipeline buffers (+ scratch + lane-padded
    output) fill, but do not exceed, the VMEM budget."""
    sub = max(8, 32 // itemsize)            # sublane multiple: 8 f32, 16 bf16

    # ---- feature tile ----
    if block_d is not None:
        TD = int(block_d)
        TD = D if TD >= D else _round_down(TD, _LANE)    # (8,128) lane rule
    elif D <= _MAX_SINGLE_D:
        TD = D                                           # single feature step
    else:
        TD = _MAX_SINGLE_D
        if D % _LANE == 0:
            # Prefer a tile that divides D -> no ragged-column masking at all.
            for cand in range(_MAX_SINGLE_D, 0, -_LANE):
                if D % cand == 0:
                    TD = cand
                    break

    multi = TD < D

    # ---- batch tile ----
    # Per row: 3 inputs x 2 pipeline buffers, the lane-padded f32 output block
    # (x2 buffers) and, for the multi-step path, two (TB, 128) f32 accumulators.
    bytes_per_row = 3 * 2 * itemsize * TD + 2 * _LANE * 4
    if multi:
        bytes_per_row += 2 * _LANE * 4
    rows = max(sub, total_budget // bytes_per_row)

    if block_b is not None:
        TB = int(block_b)
        TB = B if TB >= B else max(sub, _round_down(TB, sub))
    else:
        TB = B if B <= rows else _round_down(rows, sub)

    return TB, TD, bytes_per_row


def _sq_diffs(a_ref, p_ref, n_ref):
    a = a_ref[...].astype(jnp.float32)
    dpos = a - p_ref[...].astype(jnp.float32) + _EPS
    dneg = a - n_ref[...].astype(jnp.float32) + _EPS
    return dpos * dpos, dneg * dneg


def _losses_from_sq(dp2, dn2, margin):
    # dp2, dn2: (TB, 1) f32 sums of squares
    return jnp.maximum(jnp.sqrt(dp2) - jnp.sqrt(dn2) + margin, 0.0)


def _kernel_single(a_ref, p_ref, n_ref, o_ref, *, margin):
    """Whole feature dim in one tile: grid = (batch tiles,). No scratch."""
    sp, sn = _sq_diffs(a_ref, p_ref, n_ref)
    dp2 = jnp.sum(sp, axis=-1, keepdims=True)
    dn2 = jnp.sum(sn, axis=-1, keepdims=True)
    o_ref[...] = _losses_from_sq(dp2, dn2, margin).astype(o_ref.dtype)


def _lane_accumulate(dp2_ref, dn2_ref, sp, sn, n_chunks):
    """Lane-wise (VPU-only) accumulation of TD/128 vreg columns into (TB,128)."""
    pp = sp[:, 0:_LANE]
    nn = sn[:, 0:_LANE]
    for c in range(1, n_chunks):
        pp = pp + sp[:, c * _LANE:(c + 1) * _LANE]
        nn = nn + sn[:, c * _LANE:(c + 1) * _LANE]
    dp2_ref[...] += pp
    dn2_ref[...] += nn


def _kernel_multi(a_ref, p_ref, n_ref, o_ref, dp2_ref, dn2_ref, *, margin, D, TD):
    """2-D grid (batch tiles, feature tiles): lane-dense sum-of-squares scratch."""
    j = pl.program_id(1)
    last_j = pl.num_programs(1) - 1
    n_chunks = TD // _LANE

    @pl.when(j == 0)
    def _():
        dp2_ref[...] = jnp.zeros_like(dp2_ref)
        dn2_ref[...] = jnp.zeros_like(dn2_ref)

    sp, sn = _sq_diffs(a_ref, p_ref, n_ref)

    if D % TD != 0:
        # Ragged last feature tile: mask padded columns, but only on the last
        # step -- interior steps stay mask-free (keeps v7x memory-bound).
        @pl.when(j != last_j)
        def _():
            _lane_accumulate(dp2_ref, dn2_ref, sp, sn, n_chunks)

        @pl.when(j == last_j)
        def _():
            col = j * TD + jax.lax.broadcasted_iota(jnp.int32, sp.shape, 1)
            valid = col < D
            _lane_accumulate(dp2_ref, dn2_ref,
                             jnp.where(valid, sp, 0.0),
                             jnp.where(valid, sn, 0.0), n_chunks)
    else:
        _lane_accumulate(dp2_ref, dn2_ref, sp, sn, n_chunks)

    @pl.when(j == last_j)
    def _():
        dp2 = jnp.sum(dp2_ref[...], axis=-1, keepdims=True)
        dn2 = jnp.sum(dn2_ref[...], axis=-1, keepdims=True)
        o_ref[...] = _losses_from_sq(dp2, dn2, margin).astype(o_ref.dtype)


def triplet_margin_loss(anchor, positive, negative, margin=1.0, reduction="mean",
                        *, block_b=None, block_d=None):
    """Pallas TPU forward pass of the PyTorch TripletMarginLoss module."""
    assert anchor.shape == positive.shape == negative.shape
    assert anchor.ndim == 2, "expected (batch, features) inputs"
    if reduction not in ("none", "mean", "sum"):
        raise ValueError(f"Unsupported reduction mode: {reduction}")

    B, D = anchor.shape
    dtype = anchor.dtype
    itemsize = jnp.dtype(dtype).itemsize

    cap = _vmem_capacity_bytes()
    total_budget = int(cap * 0.70)          # headroom for compiler internals
    TB, TD, bytes_per_row = _choose_tiles(B, D, itemsize, total_budget,
                                          block_b, block_d)
    grid_b = pl.cdiv(B, TB)
    grid_d = pl.cdiv(D, TD)
    multi = grid_d > 1

    vmem_limit = min(cap, max(32 << 20, TB * bytes_per_row + (4 << 20)))

    # Per-row losses always come out as a (B, 1) column; 'mean'/'sum' finish with
    # a trivial jnp.sum below (keeps the batch axis 'parallel' for megacore).
    out_dtype = dtype if reduction == "none" else jnp.float32
    out_shape = jax.ShapeDtypeStruct((B, 1), out_dtype)

    if multi:
        kernel = functools.partial(_kernel_multi, margin=float(margin), D=D, TD=TD)
        grid = (grid_b, grid_d)
        in_specs = [pl.BlockSpec((TB, TD), lambda i, j: (i, j)) for _ in range(3)]
        out_specs = pl.BlockSpec((TB, 1), lambda i, j: (i, 0))
        scratch_shapes = [pltpu.VMEM((TB, _LANE), jnp.float32),
                          pltpu.VMEM((TB, _LANE), jnp.float32)]
        dims = ("parallel", "arbitrary")
    else:
        kernel = functools.partial(_kernel_single, margin=float(margin))
        grid = (grid_b,)
        in_specs = [pl.BlockSpec((TB, TD), lambda i: (i, 0)) for _ in range(3)]
        out_specs = pl.BlockSpec((TB, 1), lambda i: (i, 0))
        scratch_shapes = []
        dims = ("parallel",)

    out = pl.pallas_call(
        kernel,
        out_shape=out_shape,
        grid_spec=pltpu.PrefetchScalarGridSpec(
            num_scalar_prefetch=0,
            grid=grid,
            in_specs=in_specs,
            out_specs=out_specs,
            scratch_shapes=scratch_shapes),
        compiler_params=pltpu.CompilerParams(
            dimension_semantics=dims,
            vmem_limit_bytes=int(vmem_limit)),
    )(anchor, positive, negative)

    if reduction == "none":
        return out[:, 0]
    total = jnp.sum(out)
    if reduction == "mean":
        total = total / jnp.float32(B)
    return total.astype(dtype)


def _reference(anchor, positive, negative, margin=1.0, reduction="mean"):
    a = anchor.astype(jnp.float32)
    p = positive.astype(jnp.float32)
    n = negative.astype(jnp.float32)
    dp = jnp.sqrt(jnp.sum((a - p + _EPS) ** 2, axis=-1))
    dn = jnp.sqrt(jnp.sum((a - n + _EPS) ** 2, axis=-1))
    losses = jnp.maximum(dp - dn + margin, 0.0)
    if reduction == "none":
        return losses.astype(anchor.dtype)
    red = jnp.mean(losses) if reduction == "mean" else jnp.sum(losses)
    return red.astype(anchor.dtype)


if __name__ == "__main__":
    key = jax.random.PRNGKey(0)

    # Config 1: single-block, 128-d embeddings (single-pass kernel, full tiles).
    # Config 2: ragged B and D with forced small tiles (multi-step path, ragged
    #           column mask only on the last feature step, ragged batch tile).
    # Config 3: forced multi-step with D % TD == 0 (unmasked accumulation path).
    # Config 4: non-128-multiple D with default tiles (single-pass, full-D block).
    configs = [
        dict(B=16, D=128, block_b=None, block_d=None),
        dict(B=20, D=200, block_b=8, block_d=128),
        dict(B=24, D=256, block_b=None, block_d=128),
        dict(B=20, D=200, block_b=None, block_d=None),
    ]

    ok = True
    for cfg in configs:
        k1, k2, k3, key = jax.random.split(key, 4)
        B, D = cfg["B"], cfg["D"]
        anchor = jax.random.normal(k1, (B, D), dtype=jnp.float32)
        positive = jax.random.normal(k2, (B, D), dtype=jnp.float32)
        negative = jax.random.normal(k3, (B, D), dtype=jnp.float32)
        for reduction in ("mean", "sum", "none"):
            got = triplet_margin_loss(anchor, positive, negative, margin=1.0,
                                      reduction=reduction,
                                      block_b=cfg["block_b"],
                                      block_d=cfg["block_d"])
            got = jax.block_until_ready(got)
            ref = _reference(anchor, positive, negative, margin=1.0,
                             reduction=reduction)
            if not jnp.allclose(got, ref, rtol=1e-5, atol=1e-5):
                ok = False
                print(f"MISMATCH cfg={cfg} reduction={reduction}: {got} vs {ref}")

    if ok:
        print("KERNEL_OK")
</pallas_src>

<mosaic_0001>
module attributes {stable_mosaic.version = 11 : i64} {
  func.func @_kernel_single(%arg0: i32, %arg1: memref<16x128xf32, #tpu.memory_space<vmem>>, %arg2: memref<16x128xf32, #tpu.memory_space<vmem>>, %arg3: memref<16x128xf32, #tpu.memory_space<vmem>>, %arg4: memref<16x1xf32, #tpu.memory_space<vmem>>) attributes {dimension_semantics = [#tpu.dimension_semantics<parallel>], iteration_bounds = array<i64: 1>, scalar_prefetch = 0 : i64, scratch_operands = 0 : i64, tpu.core_type = #tpu.core_type<tc>, window_params = [{transform_indices = @transform_0, window_bounds = array<i64: 16, 128>}, {transform_indices = @transform_1, window_bounds = array<i64: 16, 128>}, {transform_indices = @transform_2, window_bounds = array<i64: 16, 128>}, {transform_indices = @transform_3, window_bounds = array<i64: 16, 1>}]} {
    %c0 = arith.constant 0 : index
    %c0_0 = arith.constant 0 : index
    %0 = vector.load %arg1[%c0, %c0_0] : memref<16x128xf32, #tpu.memory_space<vmem>>, vector<16x128xf32>
    %c0_1 = arith.constant 0 : index
    %c0_2 = arith.constant 0 : index
    %1 = vector.load %arg2[%c0_1, %c0_2] : memref<16x128xf32, #tpu.memory_space<vmem>>, vector<16x128xf32>
    %2 = arith.subf %0, %1 : vector<16x128xf32>
    %cst = arith.constant 9.99999997E-7 : f32
    %3 = vector.broadcast %cst : f32 to vector<16x128xf32>
    %4 = arith.addf %2, %3 : vector<16x128xf32>
    %c0_3 = arith.constant 0 : index
    %c0_4 = arith.constant 0 : index
    %5 = vector.load %arg3[%c0_3, %c0_4] : memref<16x128xf32, #tpu.memory_space<vmem>>, vector<16x128xf32>
    %6 = arith.subf %0, %5 : vector<16x128xf32>
    %cst_5 = arith.constant 9.99999997E-7 : f32
    %7 = vector.broadcast %cst_5 : f32 to vector<16x128xf32>
    %8 = arith.addf %6, %7 : vector<16x128xf32>
    %9 = arith.mulf %4, %4 : vector<16x128xf32>
    %10 = arith.mulf %8, %8 : vector<16x128xf32>
    %cst_6 = arith.constant dense<0.000000e+00> : vector<16xf32>
    %11 = vector.multi_reduction <add>, %9, %cst_6 [1] : vector<16x128xf32> to vector<16xf32>
    %12 = vector.shape_cast %11 : vector<16xf32> to vector<16x1xf32>
    %cst_7 = arith.constant dense<0.000000e+00> : vector<16xf32>
    %13 = vector.multi_reduction <add>, %10, %cst_7 [1] : vector<16x128xf32> to vector<16xf32>
    %14 = vector.shape_cast %13 : vector<16xf32> to vector<16x1xf32>
    %15 = math.sqrt %12 : vector<16x1xf32>
    %16 = math.sqrt %14 : vector<16x1xf32>
    %17 = arith.subf %15, %16 : vector<16x1xf32>
    %cst_8 = arith.constant 1.000000e+00 : f32
    %18 = vector.broadcast %cst_8 : f32 to vector<16x1xf32>
    %19 = arith.addf %17, %18 : vector<16x1xf32>
    %cst_9 = arith.constant 0.000000e+00 : f32
    %20 = vector.broadcast %cst_9 : f32 to vector<16x1xf32>
    %21 = arith.maximumf %19, %20 : vector<16x1xf32>
    %c0_10 = arith.constant 0 : index
    %c0_11 = arith.constant 0 : index
    %22 = vector.load %arg4[%c0_10, %c0_11] : memref<16x1xf32, #tpu.memory_space<vmem>>, vector<16x1xf32>
    tpu.vector_store %arg4[%c0_10, %c0_11], %21 {strides = array<i32>} : memref<16x1xf32, #tpu.memory_space<vmem>>, vector<16x1xf32>,
    return
  }
  func.func @transform_0(%arg0: i32) -> (i32, i32) {
    %c0_i32 = arith.constant 0 : i32
    %c0_i32_0 = arith.constant 0 : i32
    return %arg0, %c0_i32 : i32, i32
  }
  func.func @transform_1(%arg0: i32) -> (i32, i32) {
    %c0_i32 = arith.constant 0 : i32
    %c0_i32_0 = arith.constant 0 : i32
    return %arg0, %c0_i32 : i32, i32
  }
  func.func @transform_2(%arg0: i32) -> (i32, i32) {
    %c0_i32 = arith.constant 0 : i32
    %c0_i32_0 = arith.constant 0 : i32
    return %arg0, %c0_i32 : i32, i32
  }
  func.func @transform_3(%arg0: i32) -> (i32, i32) {
    %c0_i32 = arith.constant 0 : i32
    %c0_i32_0 = arith.constant 0 : i32
    return %arg0, %c0_i32 : i32, i32
  }
}

</mosaic_0001>

<bundles_post_ra>
// kernel: tpu_custom_call.1
= control target key start
LH: loop header
LB: loop body
LE: loop exit
PB: predicated region body
PF: predicated region fallthrough
CT: control target
= control target key end

     0   :  { %8 = vsyncpa [#allocation3], 0  ;;  %s290_s0 = inlined_call_operand.hbm [shape: f32[16,128], index: 0, kind: input, shape index: {}]   ;;  %s291_s1 = inlined_call_operand.hbm [shape: f32[16,128], index: 1, kind: input, shape index: {}]   ;;  %s292_s2 = inlined_call_operand.hbm [shape: f32[16,128], index: 2, kind: input, shape index: {}]   ;;  %s293_s3 = inlined_call_operand.vmem [shape: f32[16,1], index: 3, kind: output, shape index: {}]  }
   0x1   :  { %9 = vsyncpa [#allocation5], 0  ;;  %s207_s12 = smov [#allocation4]   ;;  %s208_s14 = smov [#allocation2]  }
   0x2   :  { %s27_s13 = sshll.u32 %s207_s12, 4  ;;  %s15_s15 = sshll.u32 %s208_s14, 4  ;;  %s28_s13 = int_to_ptr.vmem [resolvable:$true] %s27_s13  ;;  %s232_s15 = int_to_ptr.vmem [resolvable:$true] %s15_s15 }
   0x3   :  { %s137_s18 = scalar_lea.hbm %s291_s1, 256 }
   0x4   :  { %p138_p0 = scmp.ne.s32.totalorder %s291_s1, %s137_s18  ;;  %p141_p1 = scmp.lt.u32.totalorder %s137_s18, %s291_s1 }
   0x6   :  { %p143_p2 = pnand %p141_p1, %p138_p0 }
   0x8   :  { %146 = shalt.err (!%p143_p2)
}
   0x9   :  { %s147_s23 = scalar_lea.vmem %s28_s13, 256  ;;  %p152_p4 = scmp.lt.s32.totalorder %s28_s13, %s28_s13 }
   0xa   :  { %p148_p3 = scmp.ne.s32.totalorder %s28_s13, %s147_s23  ;;  %p153_p5 = scmp.lt.s32.totalorder %s147_s23, %s147_s23 }
   0xc   :  { %p154_p6 = por %p153_p5, %p152_p4 }
   0xe   :  { %p155_p7 = pnand %p154_p6, %p148_p3 }
  0x10   :  { %158 = shalt.err (!%p155_p7)
}
  0x11   :  { %s209_s24 = smov 128   ;;  %s210_s25 = smov 8  }
  0x12   :  { %33 = dma.hbm_to_vmem [thread:$0]  %s291_s1, 256, %s28_s13, [#allocation5], %s209_s24, %s209_s24, %s210_s25  }
  0x13   :  { %s159_s30 = scalar_lea.hbm %s290_s0, 256 }
  0x14   :  { %p160_p8 = scmp.ne.s32.totalorder %s290_s0, %s159_s30  ;;  %p163_p9 = scmp.lt.u32.totalorder %s159_s30, %s290_s0 }
  0x16   :  { %p165_p10 = pnand %p163_p9, %p160_p8 }
  0x18   :  { %168 = shalt.err (!%p165_p10)
}
  0x19   :  { %s169_s8 = scalar_lea.vmem %s232_s15, 256  ;;  %p174_p12 = scmp.lt.s32.totalorder %s232_s15, %s232_s15 }
  0x1a   :  { %p170_p11 = scmp.ne.s32.totalorder %s232_s15, %s169_s8  ;;  %p175_p13 = scmp.lt.s32.totalorder %s169_s8, %s169_s8 }
  0x1c   :  { %p176_p0 = por %p175_p13, %p174_p12 }
  0x1e   :  { %p177_p1 = pnand %p176_p0, %p170_p11 }
  0x20   :  { %180 = shalt.err (!%p177_p1)
}
  0x21   :  { %21 = dma.hbm_to_vmem [thread:$0]  %s290_s0, 256, %s232_s15, [#allocation3], %s209_s24, %s209_s24, %s210_s25  }
  0x22   :  { %s211_s10 = smov [#allocation6]   ;;  %s181_s14 = scalar_lea.hbm %s292_s2, 256 }
  0x23   :  { %s39_s11 = sshll.u32 %s211_s10, 4  ;;  %p182_p2 = scmp.ne.s32.totalorder %s292_s2, %s181_s14  ;;  %s40_s11 = int_to_ptr.vmem [resolvable:$true] %s39_s11 }
  0x24   :  { %p185_p3 = scmp.lt.u32.totalorder %s181_s14, %s292_s2 }
  0x26   :  { %p187_p4 = pnand %p185_p3, %p182_p2 }
  0x28   :  { %190 = shalt.err (!%p187_p4)
}
  0x29   :  { %s191_s20 = scalar_lea.vmem %s40_s11, 256  ;;  %p196_p6 = scmp.lt.s32.totalorder %s40_s11, %s40_s11 }
  0x2a   :  { %p192_p5 = scmp.ne.s32.totalorder %s40_s11, %s191_s20  ;;  %p197_p7 = scmp.lt.s32.totalorder %s191_s20, %s191_s20 }
  0x2c   :  { %p198_p8 = por %p197_p7, %p196_p6 }
  0x2e   :  { %p199_p9 = pnand %p198_p8, %p192_p5 }
  0x30   :  { %202 = shalt.err (!%p199_p9)
}
  0x31   :  { %45 = dma.hbm_to_vmem [thread:$0]  %s292_s2, 256, %s40_s11, [#allocation5], %s209_s24, %s209_s24, %s210_s25  }
  0x32   :  { %203 = dma.done.wait [#allocation3], 256  }
  0x33   :  { %204 = vsyncadd [#allocation3], 4294967040 }
  0x34   :  { %205 = dma.done.wait [#allocation5], 512  }
  0x35   :  { %206 = vsyncadd [#allocation5], 4294966784  ;;  %v55_v0 = vld [vmem:[#allocation2] sm:$0xff]  ;;  %v57_v2 = vld [vmem:[#allocation4] sm:$0xff]  ;;  %vm115_vm8 = vcmask 7168  }
  0x36   :  { %v63_v1 = vld [vmem:[#allocation6] sm:$0xff]  ;;  %v59_v4 = vsub.f32 %v55_v0, %v57_v2  ;;  %v56_v5 = vld [vmem:[#allocation2 + $0x8] sm:$0xff]  ;;  %v58_v7 = vld [vmem:[#allocation4 + $0x8] sm:$0xff] }
  0x37   :  { %v65_v3 = vsub.f32 %v55_v0, %v63_v1  ;;  %v64_v6 = vld [vmem:[#allocation6 + $0x8] sm:$0xff]  ;;  %v60_v9 = vsub.f32 %v56_v5, %v58_v7 }
  0x38   :  { %v66_v8 = vsub.f32 %v56_v5, %v64_v6  ;;  %v61_v11 = vadd.f32 1e-06, %v59_v4 }
  0x39   :  { %v67_v10 = vadd.f32 1e-06, %v65_v3  ;;  %v62_v13 = vadd.f32 1e-06, %v60_v9 }
  0x3a   :  { %v68_v12 = vadd.f32 1e-06, %v66_v8  ;;  %v69_v15 = vmul.f32 %v61_v11, %v61_v11 }
  0x3b   :  { %v71_v14 = vmul.f32 %v67_v10, %v67_v10  ;;  %v70_v17 = vmul.f32 %v62_v13, %v62_v13 }
  0x3c   :  { %73 = vadd.xlane.f32.xlu0 %v69_v15  ;;  %v72_v16 = vmul.f32 %v68_v12, %v68_v12 }
  0x3d   :  { %77 = vadd.xlane.f32.xlu1 %v71_v14 }
  0x40   :  { %75 = vadd.xlane.f32.xlu0 %v70_v17 }
  0x41   :  { %79 = vadd.xlane.f32.xlu1 %v72_v16 }
  0xc9   :  { %v74_v19 = vpop.xlane.xlu0 %73 }
  0xca   :  { %v78_v18 = vpop.xlane.xlu1 %77  ;;  %vm83_vm2 = vcmp.eq.f32.partialorder %v74_v19, inf  ;;  %v86_v28 = vand.u32 2147483648, %v74_v19  ;;  %vm85_vm3 = vcmp.eq.f32.partialorder %v74_v19, 0.0 }
  0xcb   :  { %129 = vrsqrt.f32 %v78_v18  ;;  %vm97_vm0 = vcmp.eq.f32.partialorder %v78_v18, inf  ;;  %v100_v25 = vand.u32 2147483648, %v78_v18  ;;  %vm99_vm1 = vcmp.eq.f32.partialorder %v78_v18, 0.0 }
  0xcc   :  { %131 = vrsqrt.f32 %v74_v19 }
  0xcd   :  { %v76_v21 = vpop.xlane.xlu0 %75 }
  0xce   :  { %v80_v20 = vpop.xlane.xlu1 %79  ;;  %vm90_vm6 = vcmp.eq.f32.partialorder %v76_v21, inf  ;;  %v93_v39 = vand.u32 2147483648, %v76_v21  ;;  %vm92_vm7 = vcmp.eq.f32.partialorder %v76_v21, 0.0 }
  0xcf   :  { %133 = vrsqrt.f32 %v80_v20  ;;  %vm104_vm4 = vcmp.eq.f32.partialorder %v80_v20, inf  ;;  %v107_v36 = vand.u32 2147483648, %v80_v20  ;;  %vm106_vm5 = vcmp.eq.f32.partialorder %v80_v20, 0.0 }
  0xd0   :  { %135 = vrsqrt.f32 %v76_v21 }
  0xd5   :  { %v130_v22 = vpop.eup %129 }
  0xd6   :  { %v132_v23 = vpop.eup %131  ;;  %v96_v24 = vmul.f32 %v130_v22, %v78_v18 }
  0xd7   :  { %v82_v26 = vmul.f32 %v132_v23, %v74_v19 }
  0xd8   :  { %v98_v27 = vsel %vm97_vm0, %v78_v18, %v96_v24 }
  0xd9   :  { %v134_v29 = vpop.eup %133  ;;  %v101_v30 = vsel %vm99_vm1, %v100_v25, %v98_v27  ;;  %v84_v31 = vsel %vm83_vm2, %v74_v19, %v82_v26 }
  0xda   :  { %v136_v32 = vpop.eup %135  ;;  %v87_v33 = vsel %vm85_vm3, %v86_v28, %v84_v31  ;;  %v103_v34 = vmul.f32 %v134_v29, %v80_v20 }
  0xdb   :  { %v109_v35 = vsub.f32 %v87_v33, %v101_v30  ;;  %v89_v37 = vmul.f32 %v136_v32, %v76_v21 }
  0xdc   :  { %v105_v38 = vsel %vm104_vm4, %v80_v20, %v103_v34 }
  0xdd   :  { %v111_v40 = vadd.f32 1.0, %v109_v35  ;;  %v108_v41 = vsel %vm106_vm5, %v107_v36, %v105_v38  ;;  %v91_v42 = vsel %vm90_vm6, %v76_v21, %v89_v37 }
  0xde   :  { %v94_v43 = vsel %vm92_vm7, %v93_v39, %v91_v42 }
  0xdf   :  { %v113_v44 = vmax.f32 %v111_v40, 0.0  ;;  %v110_v45 = vsub.f32 %v94_v43, %v108_v41 }
  0xe1   :  { %116 = vst.msk [vmem:[%s293_s3] sm:$0xff] %vm115_vm8, %v113_v44  ;;  %v112_v46 = vadd.f32 1.0, %v110_v45 }
  0xe3   :  { %v114_v47 = vmax.f32 %v112_v46, 0.0 }
  0xe5   :  { %117 = vst.msk [vmem:[%s293_s3 + $0x8] sm:$0xff] %vm115_vm8, %v114_v47 }
  0xe6   :  { %122 = vsyncpa [#allocation3], 1 }
  0xe7   :  { %123 = vsyncpa [#allocation5], 1 }

</bundles_post_ra>
